<compile_context>
chip_gen: v6e
topology: v6e:2x2x1
jax: 0.10.0
libtpu: 0.0.40
codegen_flags: <defaults>
</compile_context>

<pallas_src>
import math

import jax
import jax.numpy as jnp
from jax.experimental import pallas as pl
from jax.experimental.pallas import tpu as pltpu


def _multinomial_regression_kernel(x_ref, w_ref, b_ref, o_ref):
    # Linear: elementwise multiply by the (1, F) weight row, reduce over the
    # lane (feature) axis, add the SMEM scalar bias.  (tile_n, F) -> (tile_n, 1)
    logits = (
        jnp.sum(x_ref[...] * w_ref[...], axis=-1, keepdims=True) + b_ref[0]
    )
    # F.softmax over a size-1 last axis: exp(l - max)/sum == 1.0 for finite l,
    # NaN for +/-inf or NaN logits (inf - inf -> NaN).  Write that directly.
    o_ref[...] = jnp.where(jnp.isfinite(logits), 1.0, jnp.nan).astype(
        o_ref.dtype
    )


def multinomial_regression_forward(x, weight, bias, *, tile_n=1024):
    """x: (N, F) f32; weight: (1, F) f32; bias: (1,) f32 -> (N, 1) f32."""
    n, f = x.shape

    # Pick a row tile: full array if it fits in one block, otherwise a
    # multiple-of-8 tile (default 1024 rows keeps double-buffered x well under
    # the scoped VMEM limit even on v7x for realistic F).
    if n <= tile_n:
        tile_n = n
    else:
        tile_n = max(8, (tile_n // 8) * 8)

    grid = (pl.cdiv(n, tile_n),)

    return pl.pallas_call(
        _multinomial_regression_kernel,
        out_shape=jax.ShapeDtypeStruct((n, 1), jnp.float32),
        grid_spec=pl.GridSpec(
            grid=grid,
            in_specs=[
                # x: streamed tile-by-tile over N, pipelined by BlockSpec.
                pl.BlockSpec((tile_n, f), lambda i: (i, 0)),
                # weight: resident (1, F) row, same block every step.
                pl.BlockSpec((1, f), lambda i: (0, 0)),
                # bias: scalar in SMEM (no padded VMEM tile, no extra DMA
                # stream in the pipeline).
                pl.BlockSpec(memory_space=pltpu.MemorySpace.SMEM),
            ],
            out_specs=pl.BlockSpec((tile_n, 1), lambda i: (i, 0)),
        ),
        compiler_params=pltpu.CompilerParams(
            # Purely data-parallel over rows -> shard grid across TensorCores.
            dimension_semantics=("parallel",),
        ),
    )(x, weight, bias)


if __name__ == "__main__":
    # Small shapes consistent with the module: num_param features, batch rows.
    batch = 8
    num_param = 32

    key = jax.random.PRNGKey(0)
    kx, kw, kb = jax.random.split(key, 3)

    # Deterministic synthetic parameters, mimicking nn.Linear's uniform init.
    bound = 1.0 / math.sqrt(num_param)
    weight = jax.random.uniform(
        kw, (1, num_param), dtype=jnp.float32, minval=-bound, maxval=bound
    )
    bias = jax.random.uniform(
        kb, (1,), dtype=jnp.float32, minval=-bound, maxval=bound
    )

    x = jax.random.normal(kx, (batch, num_param), dtype=jnp.float32)

    out = multinomial_regression_forward(x, weight, bias)
    out = jax.block_until_ready(out)

    # Sanity: softmax over a singleton dim is all ones for finite inputs,
    # matching PyTorch F.softmax(nn.Linear(F,1)(x)) with implicit dim=1.
    assert out.shape == (batch, 1)
    assert bool(jnp.allclose(out, jnp.ones((batch, 1), jnp.float32)))

    print("KERNEL_OK")
</pallas_src>

<mosaic_0001>
module attributes {stable_mosaic.version = 11 : i64} {
  func.func @_multinomial_regression_kernel(%arg0: i32, %arg1: memref<8x32xf32, #tpu.memory_space<vmem>>, %arg2: memref<1x32xf32, #tpu.memory_space<vmem>>, %arg3: memref<1xf32, #tpu.memory_space<smem>>, %arg4: memref<8x1xf32, #tpu.memory_space<vmem>>) attributes {dimension_semantics = [#tpu.dimension_semantics<parallel>], iteration_bounds = array<i64: 1>, scalar_prefetch = 0 : i64, scratch_operands = 0 : i64, tpu.core_type = #tpu.core_type<tc>, window_params = [{transform_indices = @transform_0, window_bounds = array<i64: 8, 32>}, {pipeline_mode = #tpu.pipeline_mode<synchronous>, transform_indices = @transform_1, window_bounds = array<i64: 1, 32>}, {transform_indices = @transform_2, window_bounds = array<i64: 1>}, {transform_indices = @transform_3, window_bounds = array<i64: 8, 1>}]} {
    %c0 = arith.constant 0 : index
    %c0_0 = arith.constant 0 : index
    %0 = vector.load %arg1[%c0, %c0_0] : memref<8x32xf32, #tpu.memory_space<vmem>>, vector<8x32xf32>
    %c0_1 = arith.constant 0 : index
    %c0_2 = arith.constant 0 : index
    %1 = vector.load %arg2[%c0_1, %c0_2] : memref<1x32xf32, #tpu.memory_space<vmem>>, vector<1x32xf32>
    %2 = vector.broadcast %1 : vector<1x32xf32> to vector<8x32xf32>
    %3 = arith.mulf %0, %2 : vector<8x32xf32>
    %cst = arith.constant dense<0.000000e+00> : vector<8xf32>
    %4 = vector.multi_reduction <add>, %3, %cst [1] : vector<8x32xf32> to vector<8xf32>
    %5 = vector.shape_cast %4 : vector<8xf32> to vector<8x1xf32>
    %c0_3 = arith.constant 0 : index
    %6 = memref.load %arg3[%c0_3] : memref<1xf32, #tpu.memory_space<smem>>
    %7 = vector.broadcast %6 : f32 to vector<8x1xf32>
    %8 = arith.addf %5, %7 : vector<8x1xf32>
    %9 = tpu.weird %8 : vector<8x1xf32> -> vector<8x1xi1>
    %cst_4 = arith.constant dense<true> : vector<8x1xi1>
    %10 = arith.xori %9, %cst_4 : vector<8x1xi1>
    %cst_5 = arith.constant 1.000000e+00 : f32
    %cst_6 = arith.constant 0x7FC00000 : f32
    %11 = vector.broadcast %cst_5 : f32 to vector<8x1xf32>
    %12 = vector.broadcast %cst_6 : f32 to vector<8x1xf32>
    %13 = arith.select %10, %11, %12 : vector<8x1xi1>, vector<8x1xf32>
    %c0_7 = arith.constant 0 : index
    %c0_8 = arith.constant 0 : index
    %14 = vector.load %arg4[%c0_7, %c0_8] : memref<8x1xf32, #tpu.memory_space<vmem>>, vector<8x1xf32>
    tpu.vector_store %arg4[%c0_7, %c0_8], %13 {strides = array<i32>} : memref<8x1xf32, #tpu.memory_space<vmem>>, vector<8x1xf32>,
    return
  }
  func.func @transform_0(%arg0: i32) -> (i32, i32) {
    %c0_i32 = arith.constant 0 : i32
    %c0_i32_0 = arith.constant 0 : i32
    return %arg0, %c0_i32 : i32, i32
  }
  func.func @transform_1(%arg0: i32) -> (i32, i32) {
    %c0_i32 = arith.constant 0 : i32
    %c0_i32_0 = arith.constant 0 : i32
    %c0_i32_1 = arith.constant 0 : i32
    return %c0_i32, %c0_i32_0 : i32, i32
  }
  func.func @transform_2(%arg0: i32) -> i32 {
    %c0_i32 = arith.constant 0 : i32
    %c0_i32_0 = arith.constant 0 : i32
    return %c0_i32 : i32
  }
  func.func @transform_3(%arg0: i32) -> (i32, i32) {
    %c0_i32 = arith.constant 0 : i32
    %c0_i32_0 = arith.constant 0 : i32
    return %arg0, %c0_i32 : i32, i32
  }
}

</mosaic_0001>

<bundles_post_ra>
// kernel: tpu_custom_call.1
= control target key start
LH: loop header
LB: loop body
LE: loop exit
PB: predicated region body
PF: predicated region fallthrough
CT: control target
= control target key end

     0   :  { %9 = vsyncpa [#allocation4], 0  ;;  %s79_s12 = smov [#allocation3]   ;;  %s114_s0 = inlined_call_operand.hbm [shape: f32[8,32], index: 0, kind: input, shape index: {}]   ;;  %s115_s1 = inlined_call_operand.vmem [shape: f32[1,32], index: 1, kind: input, shape index: {}]   ;;  %s116_s2 = inlined_call_operand.<no memory space> [shape: f32[1], index: 2, kind: input, shape index: {}]   ;;  %s117_s3 = inlined_call_operand.vmem [shape: f32[8,1], index: 3, kind: output, shape index: {}]  }
   0x1   :  { %s16_s13 = sshll.u32 %s79_s12, 4  ;;  %s17_s13 = int_to_ptr.vmem [resolvable:$true] %s16_s13 }
   0x2   :  { %s65_s14 = scalar_lea.vmem %s17_s13, 128  ;;  %p70_p1 = scmp.lt.s32.totalorder %s17_s13, %s17_s13 }
   0x3   :  { %p66_p0 = scmp.ne.s32.totalorder %s17_s13, %s65_s14  ;;  %p71_p2 = scmp.lt.s32.totalorder %s65_s14, %s65_s14 }
   0x5   :  { %p72_p3 = por %p71_p2, %p70_p1 }
   0x7   :  { %p73_p4 = pnand %p72_p3, %p66_p0 }
   0x9   :  { %76 = shalt.err (!%p73_p4)
}
   0xa   :  { %19 = dma.hbm_to_vmem [thread:$0]  %s114_s0, 128, %s17_s13, [#allocation4]  }
   0xb   :  { %77 = dma.done.wait [#allocation4], 128  }
   0xc   :  { %78 = vsyncadd [#allocation4], 4294967168  ;;  %v27_v0 = vld [vmem:[#allocation3] sm:$0xff]  ;;  %vm36_vm0 = vcmask 261120   ;;  %v41_v4 = vstv %s116_s2  ;;  %vm46_vm2 = vcmask 7168   ;;  %vm80_vm3 = vmmov 1  }
   0xd   :  { %v53_v1 = vld [vmem:[%s115_s1] ss:$0 sm:$0xff]  ;;  %v81_v7 = vmov nan  }
   0xe   :  { %v35_v2 = vmul.f32 %v53_v1, %v27_v0 }
  0x10   :  { %v37_v3 = vsel %vm36_vm0, %v35_v2, 0.0 }
  0x11   :  { %38 = vadd.xlane.f32.xlu0 %v37_v3 }
  0x9a   :  { %v39_v5 = vpop.xlane.xlu0 %38 }
  0x9b   :  { %v42_v6 = vadd.f32 %v41_v4, %v39_v5 }
  0x9d   :  { %vm43_vm1 = vweird.f32 %v42_v6 }
  0x9e   :  { %vm44_vm4 = vmxor %vm43_vm1, %vm80_vm3 }
  0x9f   :  { %v45_v8 = vsel %vm44_vm4, 1.0, %v81_v7 }
  0xa0   :  { %47 = vst.msk [vmem:[%s117_s3] sm:$0xff] %vm46_vm2, %v45_v8 }
  0xa1   :  { %52 = vsyncpa [#allocation4], 1 }

</bundles_post_ra>
